<compile_context>
chip_gen: v7x
topology: tpu7x:2x2x1
jax: 0.10.0
libtpu: 0.0.40
codegen_flags: <defaults>
</compile_context>

<pallas_src>
import jax
import jax.numpy as jnp
import numpy as np
from jax.experimental import pallas as pl
from jax.experimental.pallas import tpu as pltpu


# Sentinel for padded points; never equals a (non-negative) seed class.
_PAD_ID = np.iinfo(np.int32).min


def _targets_kernel(seed_cls_ref, inst_ref, mt_ref):
    # seed_cls_ref : [B, S] int32, SMEM (scalar-prefetched seed instance ids)
    # inst_ref     : [1, 1, TN] int32, VMEM (per-point instance ids, this tile)
    # mt_ref       : [1, S, TN], VMEM (matched_targets tile, lane-dense)
    b = pl.program_id(0)
    inst = inst_ref[0]                       # [1, TN] int32
    num_seeds = mt_ref.shape[1]              # S (static, small) -> unrolled loop
    for s in range(num_seeds):
        seed_s = seed_cls_ref[b, s]          # scalar read from SMEM, splats on VALU
        mt_ref[0, pl.ds(s, 1), :] = (inst == seed_s).astype(mt_ref.dtype)


def _round_up(x, m):
    return (x + m - 1) // m * m


def _matched_targets(instance_b, seed_ids, *, targets_dtype, tile_n):
    """matched_targets[b, s, n] = (instance_b[b, n] == instance_b[b, seed_ids[b, s]])."""
    B, N = instance_b.shape
    S = seed_ids.shape[1]

    # Tiny gather of the S seed classes per batch (S elements each) stays in XLA.
    seed_cls = jnp.take_along_axis(instance_b, seed_ids.astype(jnp.int32), axis=1)  # [B, S]

    # Lane-dense 128-aligned tiling along the point axis.
    tn = tile_n if tile_n is not None else min(4096, _round_up(N, 128))
    assert tn % 128 == 0, "tile_n must be a multiple of 128"
    n_pad = _round_up(N, tn)
    if n_pad != N:
        instance_b = jnp.pad(instance_b, ((0, 0), (0, n_pad - N)),
                             constant_values=_PAD_ID)
    inst3 = instance_b.reshape(B, 1, n_pad)

    # Scoped-VMEM budget: double-buffered input + output tiles, generous margin,
    # capped at 48 MiB so it also fits v7x's 64 MiB physical VMEM.
    itemsize = jnp.dtype(targets_dtype).itemsize
    step_bytes = 2 * (4 * tn + S * tn * itemsize)
    vmem_limit = int(min(48 * 1024 * 1024, max(32 * 1024 * 1024, 8 * step_bytes)))

    mt = pl.pallas_call(
        _targets_kernel,
        out_shape=jax.ShapeDtypeStruct((B, S, n_pad), targets_dtype),
        grid_spec=pltpu.PrefetchScalarGridSpec(
            num_scalar_prefetch=1,                       # seed_cls -> SMEM
            grid=(B, n_pad // tn),
            in_specs=[
                pl.BlockSpec((1, 1, tn), lambda b, n, seed: (b, 0, n)),
            ],
            out_specs=pl.BlockSpec((1, S, tn), lambda b, n, seed: (b, 0, n)),
        ),
        compiler_params=pltpu.CompilerParams(
            dimension_semantics=("parallel", "parallel"),
            vmem_limit_bytes=vmem_limit,
        ),
    )(seed_cls, inst3)

    if n_pad != N:
        mt = mt[:, :, :N]
    return mt


def my_matcher_forward(outputs, targets, offset, *, targets_dtype=jnp.float32,
                       tile_n=None, as_lists=False):
    """Pallas implementation of MyMatcher.forward.

    Returns (matched_outputs, matched_targets, indices) with indices == [].
    By default the first two are stacked arrays [B, Q, N] / [B, S, N] (the
    PyTorch lists correspond to mo[b] / mt[b]); pass as_lists=True for the
    exact list-of-per-batch-tensors structure.
    """
    outputs_mask = outputs["outputs_mask"]          # [B*N, Q] float
    instance = targets["instance"]                  # [B*N]    int
    seed_ids = targets["seed_ids"]                  # [B, S]   int

    B, S = seed_ids.shape
    Ntot, Q = outputs_mask.shape
    N = Ntot // B

    # Equal-size batch segments assumed (regular grid); validated when `offset`
    # is concrete.  TODO(synk): ragged per-batch segments (general `offset`)
    # would need scalar-prefetched offsets + pl.BoundedSlice tiles.
    try:
        offset_np = np.asarray(offset)
    except Exception:  # traced under jit -> skip the static validation
        offset_np = None
    if offset_np is not None:
        assert np.all(offset_np == (np.arange(B) + 1) * N), "equal-size segments assumed"

    # matched_outputs: pure relayout [B*N, Q] -> B x [Q, N].  Kept in XLA (or to
    # be fused into the downstream consumer) instead of a lane-sparse Pallas
    # block + in-kernel XLU transpose (the v1 bottleneck).
    matched_outputs = jnp.transpose(outputs_mask.reshape(B, N, Q), (0, 2, 1))   # [B, Q, N]

    instance_b = instance.reshape(B, N).astype(jnp.int32)
    matched_targets = _matched_targets(instance_b, seed_ids,
                                       targets_dtype=targets_dtype,
                                       tile_n=tile_n)                            # [B, S, N]

    indices = []
    if as_lists:
        return ([matched_outputs[b] for b in range(B)],
                [matched_targets[b] for b in range(B)],
                indices)
    return matched_outputs, matched_targets, indices


def _reference_forward(outputs, targets, offset):
    """Pure-JAX reference mirroring the PyTorch loop."""
    outputs_mask = outputs["outputs_mask"]
    instance = targets["instance"]
    seed_ids = targets["seed_ids"]
    matched_outputs, matched_targets = [], []
    start = 0
    for i, end in enumerate(list(np.asarray(offset))):
        om = outputs_mask[start:end].T                                   # [Q, N]
        inst = instance[start:end]                                       # [N]
        one_hot_t = jax.nn.one_hot(inst, int(jnp.max(inst)) + 1).T       # [C, N]
        seed_cls = inst[seed_ids[i]]                                     # [S]
        masks_tgt = one_hot_t[seed_cls].astype(jnp.float32)              # [S, N]
        matched_outputs.append(om)
        matched_targets.append(masks_tgt)
        start = end
    return matched_outputs, matched_targets, []


if __name__ == "__main__":
    # N deliberately NOT 128-aligned to exercise the padding/masking path.
    B, N, Q, S, C = 2, 320, 16, 8, 10

    key = jax.random.PRNGKey(0)
    k1, k2, k3 = jax.random.split(key, 3)

    outputs_mask = jax.random.normal(k1, (B * N, Q), dtype=jnp.float32)
    instance = jax.random.randint(k2, (B * N,), 0, C, dtype=jnp.int32)
    seed_ids = jax.random.randint(k3, (B, S), 0, N, dtype=jnp.int32)
    offset = jnp.array([(i + 1) * N for i in range(B)], dtype=jnp.int32)

    outputs = {"outputs_mask": outputs_mask}
    targets = {"instance": instance, "seed_ids": seed_ids}

    # Tiled path: tile_n=128 -> grid (B, 3) over the padded 384-point axis.
    mo, mt, idx = my_matcher_forward(outputs, targets, offset, tile_n=128)
    jax.block_until_ready(mo)
    jax.block_until_ready(mt)

    ref_mo, ref_mt, _ = _reference_forward(outputs, targets, offset)
    for b in range(B):
        np.testing.assert_allclose(np.asarray(mo[b]), np.asarray(ref_mo[b]), rtol=0, atol=0)
        np.testing.assert_allclose(np.asarray(mt[b]), np.asarray(ref_mt[b]), rtol=0, atol=0)
    assert idx == []

    # Also exercise the bf16 targets output (halved HBM write traffic) and the
    # PyTorch-style list return structure.
    mo_l, mt_l, _ = my_matcher_forward(outputs, targets, offset,
                                       targets_dtype=jnp.bfloat16, as_lists=True)
    jax.block_until_ready(mt_l[0])
    for b in range(B):
        np.testing.assert_allclose(np.asarray(mo_l[b]), np.asarray(ref_mo[b]), rtol=0, atol=0)
        np.testing.assert_allclose(np.asarray(mt_l[b]).astype(np.float32),
                                   np.asarray(ref_mt[b]), rtol=0, atol=0)

    print("KERNEL_OK")
</pallas_src>

<mosaic_0001>
module attributes {stable_mosaic.version = 11 : i64} {
  func.func @_targets_kernel(%arg0: i32, %arg1: i32, %arg2: memref<2x8xi32, #tpu.memory_space<smem>>, %arg3: memref<1x1x128xi32, #tpu.memory_space<vmem>>, %arg4: memref<1x8x128xf32, #tpu.memory_space<vmem>>) attributes {dimension_semantics = [#tpu.dimension_semantics<parallel>, #tpu.dimension_semantics<parallel>], iteration_bounds = array<i64: 2, 3>, scalar_prefetch = 1 : i64, scratch_operands = 0 : i64, tpu.core_type = #tpu.core_type<tc>, window_params = [{transform_indices = @transform_0, window_bounds = array<i64: 1, 1, 128>}, {transform_indices = @transform_1, window_bounds = array<i64: 1, 8, 128>}]} {
    %c0 = arith.constant 0 : index
    %c0_0 = arith.constant 0 : index
    %c0_1 = arith.constant 0 : index
    %0 = vector.load %arg3[%c0, %c0_0, %c0_1] : memref<1x1x128xi32, #tpu.memory_space<vmem>>, vector<1x1x128xi32>
    %1 = vector.shape_cast %0 : vector<1x1x128xi32> to vector<1x128xi32>
    %2 = arith.index_cast %arg0 : i32 to index
    %c0_2 = arith.constant 0 : index
    %3 = memref.load %arg2[%2, %c0_2] : memref<2x8xi32, #tpu.memory_space<smem>>
    %4 = vector.broadcast %3 : i32 to vector<1x128xi32>
    %5 = arith.cmpi eq, %1, %4 : vector<1x128xi32>
    %6 = arith.extui %5 : vector<1x128xi1> to vector<1x128xi32>
    %7 = arith.sitofp %6 : vector<1x128xi32> to vector<1x128xf32>
    %c0_3 = arith.constant 0 : index
    %c0_4 = arith.constant 0 : index
    %c0_5 = arith.constant 0 : index
    %8 = vector.load %arg4[%c0_3, %c0_4, %c0_5] : memref<1x8x128xf32, #tpu.memory_space<vmem>>, vector<1x1x128xf32>
    %9 = vector.shape_cast %8 : vector<1x1x128xf32> to vector<1x128xf32>
    %10 = vector.shape_cast %7 : vector<1x128xf32> to vector<1x1x128xf32>
    tpu.vector_store %arg4[%c0_3, %c0_4, %c0_5], %10 {strides = array<i32>} : memref<1x8x128xf32, #tpu.memory_space<vmem>>, vector<1x1x128xf32>,
    %11 = arith.index_cast %arg0 : i32 to index
    %c1 = arith.constant 1 : index
    %12 = memref.load %arg2[%11, %c1] : memref<2x8xi32, #tpu.memory_space<smem>>
    %13 = vector.broadcast %12 : i32 to vector<1x128xi32>
    %14 = arith.cmpi eq, %1, %13 : vector<1x128xi32>
    %15 = arith.extui %14 : vector<1x128xi1> to vector<1x128xi32>
    %16 = arith.sitofp %15 : vector<1x128xi32> to vector<1x128xf32>
    %c0_6 = arith.constant 0 : index
    %c1_7 = arith.constant 1 : index
    %c0_8 = arith.constant 0 : index
    %17 = vector.load %arg4[%c0_6, %c1_7, %c0_8] : memref<1x8x128xf32, #tpu.memory_space<vmem>>, vector<1x1x128xf32>
    %18 = vector.shape_cast %17 : vector<1x1x128xf32> to vector<1x128xf32>
    %19 = vector.shape_cast %16 : vector<1x128xf32> to vector<1x1x128xf32>
    tpu.vector_store %arg4[%c0_6, %c1_7, %c0_8], %19 {strides = array<i32>} : memref<1x8x128xf32, #tpu.memory_space<vmem>>, vector<1x1x128xf32>,
    %20 = arith.index_cast %arg0 : i32 to index
    %c2 = arith.constant 2 : index
    %21 = memref.load %arg2[%20, %c2] : memref<2x8xi32, #tpu.memory_space<smem>>
    %22 = vector.broadcast %21 : i32 to vector<1x128xi32>
    %23 = arith.cmpi eq, %1, %22 : vector<1x128xi32>
    %24 = arith.extui %23 : vector<1x128xi1> to vector<1x128xi32>
    %25 = arith.sitofp %24 : vector<1x128xi32> to vector<1x128xf32>
    %c0_9 = arith.constant 0 : index
    %c2_10 = arith.constant 2 : index
    %c0_11 = arith.constant 0 : index
    %26 = vector.load %arg4[%c0_9, %c2_10, %c0_11] : memref<1x8x128xf32, #tpu.memory_space<vmem>>, vector<1x1x128xf32>
    %27 = vector.shape_cast %26 : vector<1x1x128xf32> to vector<1x128xf32>
    %28 = vector.shape_cast %25 : vector<1x128xf32> to vector<1x1x128xf32>
    tpu.vector_store %arg4[%c0_9, %c2_10, %c0_11], %28 {strides = array<i32>} : memref<1x8x128xf32, #tpu.memory_space<vmem>>, vector<1x1x128xf32>,
    %29 = arith.index_cast %arg0 : i32 to index
    %c3 = arith.constant 3 : index
    %30 = memref.load %arg2[%29, %c3] : memref<2x8xi32, #tpu.memory_space<smem>>
    %31 = vector.broadcast %30 : i32 to vector<1x128xi32>
    %32 = arith.cmpi eq, %1, %31 : vector<1x128xi32>
    %33 = arith.extui %32 : vector<1x128xi1> to vector<1x128xi32>
    %34 = arith.sitofp %33 : vector<1x128xi32> to vector<1x128xf32>
    %c0_12 = arith.constant 0 : index
    %c3_13 = arith.constant 3 : index
    %c0_14 = arith.constant 0 : index
    %35 = vector.load %arg4[%c0_12, %c3_13, %c0_14] : memref<1x8x128xf32, #tpu.memory_space<vmem>>, vector<1x1x128xf32>
    %36 = vector.shape_cast %35 : vector<1x1x128xf32> to vector<1x128xf32>
    %37 = vector.shape_cast %34 : vector<1x128xf32> to vector<1x1x128xf32>
    tpu.vector_store %arg4[%c0_12, %c3_13, %c0_14], %37 {strides = array<i32>} : memref<1x8x128xf32, #tpu.memory_space<vmem>>, vector<1x1x128xf32>,
    %38 = arith.index_cast %arg0 : i32 to index
    %c4 = arith.constant 4 : index
    %39 = memref.load %arg2[%38, %c4] : memref<2x8xi32, #tpu.memory_space<smem>>
    %40 = vector.broadcast %39 : i32 to vector<1x128xi32>
    %41 = arith.cmpi eq, %1, %40 : vector<1x128xi32>
    %42 = arith.extui %41 : vector<1x128xi1> to vector<1x128xi32>
    %43 = arith.sitofp %42 : vector<1x128xi32> to vector<1x128xf32>
    %c0_15 = arith.constant 0 : index
    %c4_16 = arith.constant 4 : index
    %c0_17 = arith.constant 0 : index
    %44 = vector.load %arg4[%c0_15, %c4_16, %c0_17] : memref<1x8x128xf32, #tpu.memory_space<vmem>>, vector<1x1x128xf32>
    %45 = vector.shape_cast %44 : vector<1x1x128xf32> to vector<1x128xf32>
    %46 = vector.shape_cast %43 : vector<1x128xf32> to vector<1x1x128xf32>
    tpu.vector_store %arg4[%c0_15, %c4_16, %c0_17], %46 {strides = array<i32>} : memref<1x8x128xf32, #tpu.memory_space<vmem>>, vector<1x1x128xf32>,
    %47 = arith.index_cast %arg0 : i32 to index
    %c5 = arith.constant 5 : index
    %48 = memref.load %arg2[%47, %c5] : memref<2x8xi32, #tpu.memory_space<smem>>
    %49 = vector.broadcast %48 : i32 to vector<1x128xi32>
    %50 = arith.cmpi eq, %1, %49 : vector<1x128xi32>
    %51 = arith.extui %50 : vector<1x128xi1> to vector<1x128xi32>
    %52 = arith.sitofp %51 : vector<1x128xi32> to vector<1x128xf32>
    %c0_18 = arith.constant 0 : index
    %c5_19 = arith.constant 5 : index
    %c0_20 = arith.constant 0 : index
    %53 = vector.load %arg4[%c0_18, %c5_19, %c0_20] : memref<1x8x128xf32, #tpu.memory_space<vmem>>, vector<1x1x128xf32>
    %54 = vector.shape_cast %53 : vector<1x1x128xf32> to vector<1x128xf32>
    %55 = vector.shape_cast %52 : vector<1x128xf32> to vector<1x1x128xf32>
    tpu.vector_store %arg4[%c0_18, %c5_19, %c0_20], %55 {strides = array<i32>} : memref<1x8x128xf32, #tpu.memory_space<vmem>>, vector<1x1x128xf32>,
    %56 = arith.index_cast %arg0 : i32 to index
    %c6 = arith.constant 6 : index
    %57 = memref.load %arg2[%56, %c6] : memref<2x8xi32, #tpu.memory_space<smem>>
    %58 = vector.broadcast %57 : i32 to vector<1x128xi32>
    %59 = arith.cmpi eq, %1, %58 : vector<1x128xi32>
    %60 = arith.extui %59 : vector<1x128xi1> to vector<1x128xi32>
    %61 = arith.sitofp %60 : vector<1x128xi32> to vector<1x128xf32>
    %c0_21 = arith.constant 0 : index
    %c6_22 = arith.constant 6 : index
    %c0_23 = arith.constant 0 : index
    %62 = vector.load %arg4[%c0_21, %c6_22, %c0_23] : memref<1x8x128xf32, #tpu.memory_space<vmem>>, vector<1x1x128xf32>
    %63 = vector.shape_cast %62 : vector<1x1x128xf32> to vector<1x128xf32>
    %64 = vector.shape_cast %61 : vector<1x128xf32> to vector<1x1x128xf32>
    tpu.vector_store %arg4[%c0_21, %c6_22, %c0_23], %64 {strides = array<i32>} : memref<1x8x128xf32, #tpu.memory_space<vmem>>, vector<1x1x128xf32>,
    %65 = arith.index_cast %arg0 : i32 to index
    %c7 = arith.constant 7 : index
    %66 = memref.load %arg2[%65, %c7] : memref<2x8xi32, #tpu.memory_space<smem>>
    %67 = vector.broadcast %66 : i32 to vector<1x128xi32>
    %68 = arith.cmpi eq, %1, %67 : vector<1x128xi32>
    %69 = arith.extui %68 : vector<1x128xi1> to vector<1x128xi32>
    %70 = arith.sitofp %69 : vector<1x128xi32> to vector<1x128xf32>
    %c0_24 = arith.constant 0 : index
    %c7_25 = arith.constant 7 : index
    %c0_26 = arith.constant 0 : index
    %71 = vector.load %arg4[%c0_24, %c7_25, %c0_26] : memref<1x8x128xf32, #tpu.memory_space<vmem>>, vector<1x1x128xf32>
    %72 = vector.shape_cast %71 : vector<1x1x128xf32> to vector<1x128xf32>
    %73 = vector.shape_cast %70 : vector<1x128xf32> to vector<1x1x128xf32>
    tpu.vector_store %arg4[%c0_24, %c7_25, %c0_26], %73 {strides = array<i32>} : memref<1x8x128xf32, #tpu.memory_space<vmem>>, vector<1x1x128xf32>,
    return
  }
  func.func @transform_0(%arg0: i32, %arg1: i32, %arg2: memref<2x8xi32, #tpu.memory_space<smem>>) -> (i32, i32, i32) {
    %c0_i32 = arith.constant 0 : i32
    %c0_i32_0 = arith.constant 0 : i32
    return %arg0, %c0_i32, %arg1 : i32, i32, i32
  }
  func.func @transform_1(%arg0: i32, %arg1: i32, %arg2: memref<2x8xi32, #tpu.memory_space<smem>>) -> (i32, i32, i32) {
    %c0_i32 = arith.constant 0 : i32
    %c0_i32_0 = arith.constant 0 : i32
    return %arg0, %c0_i32, %arg1 : i32, i32, i32
  }
}

</mosaic_0001>

<bundles_post_ra>
// kernel: tpu_custom_call.1
= control target key start
LH: loop header
LB: loop body
LE: loop exit
PB: predicated region body
PF: predicated region fallthrough
CT: control target
= control target key end

     0   :  { %s798_s0 = inlined_call_operand.hbm [shape: s32[2,8], index: 0, kind: input, shape index: {}]   ;;  %s799_s1 = inlined_call_operand.hbm [shape: s32[2,1,384], index: 1, kind: input, shape index: {}]   ;;  %s800_s2 = inlined_call_operand.hbm [shape: f32[2,8,384], index: 2, kind: output, shape index: {}]  }
   0x1   :  { %803 = sst [smem:[#allocation12_spill]] %s799_s1  ;;  %s409_s11 = scalar_lea.hbm %s798_s0, 32 }
   0x2   :  { %p410_p0 = scmp.ne.s32.totalorder %s798_s0, %s409_s11  ;;  %p413_p1 = scmp.lt.u32.totalorder %s409_s11, %s798_s0 }
   0x4   :  { %p415_p2 = pnand %p413_p1, %p410_p0 }
   0x6   :  { %418 = shalt.err (!%p415_p2)  }
   0x7   :  { %s551_s16 = smov [#allocation3]  }
   0x8   :  { %8 = dma.hbm_to_smem %s798_s0, 32, %s551_s16, [#allocation2] }
   0x9   :  { %509 = dma.done.wait [#allocation2], 32 }
   0xa   :  { %510 = vsyncadd [#allocation2], 4294967264 }
   0xb   :  { %10 = sfence }
   0xc   :  { %11 = vsyncpa [#allocation5], 0 }
   0xd   :  { %13 = vsyncpa [#allocation5 + $0x1], 0 }
   0xe   :  { %14 = vsyncpa [#allocation6], 0 }
   0xf   :  { %16 = vsyncpa [#allocation6 + $0x1], 0  ;;  %s582_s19 = smov 0   ;;  %s584_s20 = smov 0  }
  0x10   :  { %s586_s21 = smov 0   ;;  %s588_s22 = smov 0  }
  0x11   :  { %s590_s23 = smov 0   ;;  %s592_s24 = smov 0  }
  0x12   :  { %s594_s0 = smov 0   ;;  %s596_s25 = smov 0  }
  0x13 LB: > { %s307_s26 = sadd.s32 4294967295, %s549_s25   ;;  %s308_s27 = sadd.s32 4294967294, %s549_s25   ;;  %s549_s25 = sphi %s596_s25, %s22_s25   ;;  %s545_s0 = sphi %s594_s0, %s822_s0   ;;  %s541_s24 = sphi %s592_s24, %s821_s24   ;;  %s537_s23 = sphi %s590_s23, %s820_s23   ;;  %s533_s22 = sphi %s588_s22, %s819_s22   ;;  %s529_s21 = sphi %s586_s21, %s818_s21   ;;  %s525_s20 = sphi %s584_s20, %s817_s20   ;;  %s521_s19 = sphi %s582_s19, %s816_s19  }
  0x14   : > { %s31_s28 = sadd.s32 1, %s541_s24  ;;  %s34_s29 = sadd.s32 1, %s545_s0 }
  0x15   : > { %p32_p3 = scmp.ge.s32.totalorder %s31_s28, 3  ;;  %s43_s30 = sadd.s32 1, %s529_s21 }
  0x16   : > { %p50_p4 = scmp.ne.s32.totalorder %s529_s21, %s525_s20  ;;  %p51_p5 = scmp.eq.s32.totalorder %s549_s25, 0 }
  0x17   : > { %s824_s28 = smov (%p32_p3, %s31_s28), 0  ;;  %s826_s29 = smov (!%p32_p3, %s34_s29), %s545_s0 }
  0x18   : > { %s39_s3 = ssub.s32 %s541_s24, %s824_s28  ;;  %p635_p6 = por %p51_p5, %p50_p4 }
  0x19   : > { %p36_p7 = scmp.ge.s32.totalorder %s826_s29, 2  ;;  %p56_p8 = scmp.ne.s32.totalorder %s525_s20, %s521_s19 }
  0x1a   : > { %p57_p9 = scmp.eq.s32.totalorder %s307_s26, 0  ;;  %p82_p10 = scmp.eq.s32.totalorder %s307_s26, 5 }
  0x1b   : > { %s828_s29 = smov (%p36_p7, %s826_s29), 0  ;;  %p88_p13 = scmp.eq.s32.totalorder %s308_s27, 5 }
  0x1c   : > { %805 = sst [smem:[#allocation11_spill]] %s828_s29  ;;  %p643_p11 = por %p57_p9, %p56_p8 }
  0x1d   : > { %p647_p12 = por %p82_p10, %p50_p4  ;;  %s38_s7 = ssub.s32 %s545_s0, %s828_s29 }
  0x1e   : > { %s40_s8 = sor.u32 %s39_s3, %s38_s7  ;;  %p653_p1 = por %p88_p13, %p56_p8 }
  0x1f   : > { %s807_s6 = scalar_select %p647_p12, 1, 0 }
  0x20   : > { %p41_p0 = scmp.eq.s32.totalorder %s40_s8, 0  ;;  %p341_p2 = scmp.lt.s32.totalorder %s549_s25, 6 }
  0x21   : > { %s808_s9 = scalar_select %p653_p1, 1, 0 }
  0x22   : > { %s108_s10 = sand.u32 1, %s529_s21   ;;  %s327_s12 = smul.u32 3, %s545_s0 }
  0x23   : > { %s660_s11 = scalar_select %p41_p0, %s529_s21, %s43_s30  }
  0x24   : > { %s111_s13 = scalar_lea.vmem [#allocation4], %s108_s10  ;;  %p667_p3 = pnand %p341_p2, %p635_p6 }
  0x25   : > { %s120_s14 = sshll.u32 %s111_s13, 4  ;;  %s116_s16 = sadd.s32 %s541_s24, %s327_s12  ;;  %s663_s14 = int_to_ptr.vmem [resolvable:$true] %s120_s14 }
  0x26   : > { %s311_s17 = sshll.u32 %s116_s16, 4  ;;  %s810_s1 = sld [smem:[#allocation12_spill]] }
  0x27   : > { %s109_s30 = scalar_lea.sflag [#allocation5], %s108_s10  ;;  %p421_p7 = pneg %p667_p3 }
  0x2c   : > { %s676_s27 = scalar_lea.hbm %s810_s1, %s311_s17  ;;  %s424_s8 = scalar_lea.hbm %s810_s1, 96 }
  0x2d   : > { %s419_s3 = scalar_lea.hbm %s676_s27, 16  ;;  %p425_p10 = scmp.lt.u32.totalorder %s676_s27, %s810_s1 }
  0x2e   : > { %p420_p6 = scmp.ne.s32.totalorder %s676_s27, %s419_s3  ;;  %p426_p13 = scmp.lt.u32.totalorder %s424_s8, %s419_s3 }
  0x2f   : > { %p428_p2 = scmp.lt.u32.totalorder %s419_s3, %s676_s27 }
  0x30   : > { %p422_p8 = pnand %p421_p7, %p420_p6  ;;  %p427_p0 = por %p426_p13, %p425_p10 }
  0x32   : > { %p423_p9 = pneg %p422_p8  ;;  %p429_p4 = por %p428_p2, %p427_p0 }
  0x34   : > { %p430_p5 = pnand %p429_p4, %p423_p9 }
  0x36   : > { %433 = shalt.err (!%p430_p5)
}
  0x37   : > { %s434_s10 = scalar_lea.vmem %s663_s14, 16  ;;  %s552_s16 = smov [#allocation4]  }
  0x38   : > { %p435_p6 = scmp.ne.s32.totalorder %s663_s14, %s434_s10  ;;  %s439_s17 = sshll.u32 %s552_s16, 4  ;;  %s440_s17 = int_to_ptr.vmem [resolvable:$false] %s439_s17 }
  0x39   : > { %s441_s18 = scalar_lea.vmem %s440_s17, 32  ;;  %p442_p12 = scmp.lt.s32.totalorder %s663_s14, %s440_s17 }
  0x3a   : > { %p437_p8 = pnand %p435_p6, %p421_p7  ;;  %p443_p10 = scmp.lt.s32.totalorder %s441_s18, %s434_s10 }
  0x3c   : > { %p438_p1 = pneg %p437_p8  ;;  %p444_p13 = por %p443_p10, %p442_p12 }
  0x3e   : > { %p445_p0 = pnand %p444_p13, %p438_p1 }
  0x40   : > { %448 = shalt.err (!%p445_p0)
}
  0x41   : > { %336 = dma.hbm_to_vmem [thread:$0]  (!%p667_p3), %s676_s27, 16, %s663_s14, %s109_s30  }
  0x42   : > { %p811_p4 = scmp.lt.s32.totalorder %s549_s25, 7  ;;  %p812_p5 = scmp.ge.s32.totalorder %s549_s25, 1 }
  0x44   : > { %p126_p7 = pnand %p812_p5, %p811_p4 }
  0x45   : > { %s709_s26 = sand.u32 (!%p126_p7), 1, %s525_s20  }
  0x46   : > { %129 = sbr.rel (%p126_p7) target bundleno = 113 (0x71), region = 24  ;;  %s132_s3 = scalar_lea.sflag (!%p126_p7), [#allocation5], %s709_s26 }
  0x47   : > { %s134_s4 = scalar_lea.vmem (!%p126_p7), [#allocation4], %s709_s26 }
  0x4d   : > { %512 = dma.done.wait (%p643_p11), %s132_s3, 16  }
  0x4e   : > { %514 = vsyncadd (%p643_p11), %s132_s3, 4294967280  ;;  %s313_s14 = sshll.u32 %s709_s26, 3  ;;  %s314_s15 = sshll.u32 %s537_s23, 7  ;;  %v152_v0 = vld [vmem:[%s134_s4] sm:$0x1]  ;;  %v553_v2 = vmov 0.0  }
  0x4f   : > { %s154_s27 = sld [smem:[#allocation3 + %s314_s15]]  ;;  %s160_s30 = sadd.s32 1, %s314_s15 }
  0x50   : > { %s167_s7 = sadd.s32 2, %s314_s15  ;;  %s161_s8 = sld [smem:[#allocation3 + %s160_s30]] }
  0x51   : > { %s168_s12 = sld [smem:[#allocation3 + %s167_s7]]  ;;  %s174_s13 = sadd.s32 3, %s314_s15 }
  0x52   : > { %s181_s10 = sadd.s32 4, %s314_s15  ;;  %s175_s16 = sld [smem:[#allocation3 + %s174_s13]] }
  0x53   : > { %s182_s17 = sld [smem:[#allocation3 + %s181_s10]]  ;;  %s188_s18 = sadd.s32 5, %s314_s15 }
  0x54   : > { %s195_s1 = sadd.s32 6, %s314_s15  ;;  %s719_s5 = sld [smem:[#allocation3 + %s188_s18]] }
  0x55   : > { %v155_v1 = vstv %s154_s27  ;;  %s721_s3 = sld [smem:[#allocation3 + %s195_s1]]  ;;  %s202_s29 = sadd.s32 7, %s314_s15 }
  0x56   : > { %vm156_vm0 = vcmp.eq.s32.totalorder %v152_v0, %v155_v1  ;;  %v162_v4 = vstv %s161_s8  ;;  %s723_s30 = sld [smem:[#allocation3 + %s202_s29]]  ;;  %s328_s7 = smul.u32 3, %s537_s23 }
  0x57   : > { %v315_v3 = vsel %vm156_vm0, 1.0, %v553_v2  ;;  %v169_v5 = vstv %s168_s12  ;;  %s726_s13 = scalar_lea.vmem [#allocation7], %s313_s14  ;;  %vm163_vm1 = vcmp.eq.s32.totalorder %v152_v0, %v162_v4  ;;  %s210_s15 = scalar_lea.sflag [#allocation6], %s709_s26 }
  0x58   : > { %159 = vst [vmem:[%s726_s13] sm:$0x1] %v315_v3  ;;  %vm170_vm2 = vcmp.eq.s32.totalorder %v152_v0, %v169_v5  ;;  %v316_v6 = vsel %vm163_vm1, 1.0, %v553_v2  ;;  %v176_v8 = vstv %s175_s16  ;;  %s221_s1 = sadd.s32 %s533_s22, %s328_s7  ;;  %s225_s29 = sshll.u32 %s726_s13, 4  ;;  %s745_s29 = int_to_ptr.vmem [resolvable:$true] %s225_s29 }
  0x59   : > { %v317_v7 = vsel %vm170_vm2, 1.0, %v553_v2  ;;  %v183_v9 = vstv %s182_s17  ;;  %166 = vst [vmem:[%s726_s13 + $0x1] sm:$0x1] %v316_v6  ;;  %vm177_vm3 = vcmp.eq.s32.totalorder %v152_v0, %v176_v8  ;;  %s324_s23 = sshll.u32 %s221_s1, 7  ;;  %s449_s27 = scalar_lea.vmem %s745_s29, 128 }
  0x5a   : > { %173 = vst [vmem:[%s726_s13 + $0x2] sm:$0x1] %v317_v7  ;;  %vm184_vm4 = vcmp.eq.s32.totalorder %v152_v0, %v183_v9  ;;  %v318_v10 = vsel %vm177_vm3, 1.0, %v553_v2  ;;  %v190_v12 = vstv %s719_s5  ;;  %s743_s14 = scalar_lea.hbm %s800_s2, %s324_s23  ;;  %p450_p11 = scmp.ne.s32.totalorder %s745_s29, %s449_s27 }
  0x5b   : > { %v319_v11 = vsel %vm184_vm4, 1.0, %v553_v2  ;;  %v197_v13 = vstv %s721_s3  ;;  %180 = vst [vmem:[%s726_s13 + $0x3] sm:$0x1] %v318_v10  ;;  %vm191_vm5 = vcmp.eq.s32.totalorder %v152_v0, %v190_v12  ;;  %p813_p12 = scmp.ne.s32.totalorder %s807_s6, 0  ;;  %s554_s8 = smov [#allocation7]  }
  0x5c   : > { %187 = vst [vmem:[%s726_s13 + $0x4] sm:$0x1] %v319_v11  ;;  %vm198_vm6 = vcmp.eq.s32.totalorder %v152_v0, %v197_v13  ;;  %v320_v14 = vsel %vm191_vm5, 1.0, %v553_v2  ;;  %v204_v16 = vstv %s723_s30  ;;  %s453_s12 = sshll.u32 %s554_s8, 4  ;;  %s454_s12 = int_to_ptr.vmem [resolvable:$false] %s453_s12 }
  0x5d   : > { %v321_v15 = vsel %vm198_vm6, 1.0, %v553_v2  ;;  %194 = vst [vmem:[%s726_s13 + $0x5] sm:$0x1] %v320_v14  ;;  %vm205_vm7 = vcmp.eq.s32.totalorder %v152_v0, %v204_v16  ;;  %p451_p1 = pnand %p450_p11, %p813_p12  ;;  %s455_s10 = scalar_lea.vmem %s454_s12, 256 }
  0x5e   : > { %201 = vst [vmem:[%s726_s13 + $0x6] sm:$0x1] %v321_v15  ;;  %v322_v17 = vsel %vm205_vm7, 1.0, %v553_v2  ;;  %p456_p9 = scmp.lt.s32.totalorder %s745_s29, %s454_s12  ;;  %p457_p2 = scmp.lt.s32.totalorder %s455_s10, %s449_s27 }
  0x5f   : > { %208 = vst [vmem:[%s726_s13 + $0x7] sm:$0x1] %v322_v17  ;;  %p452_p3 = pneg %p451_p1 }
  0x60   : > { %p458_p6 = por %p457_p2, %p456_p9 }
  0x62   : > { %p459_p8 = pnand %p458_p6, %p452_p3 }
  0x64   : > { %462 = shalt.err (!%p459_p8)
}
  0x65   : > { %s463_s26 = scalar_lea.hbm %s743_s14, 128  ;;  %s467_s18 = scalar_lea.hbm %s800_s2, 768 }
  0x66   : > { %p464_p10 = scmp.ne.s32.totalorder %s743_s14, %s463_s26  ;;  %p468_p4 = scmp.lt.u32.totalorder %s743_s14, %s800_s2 }
  0x67   : > { %p469_p5 = scmp.lt.u32.totalorder %s467_s18, %s463_s26  ;;  %p471_p11 = scmp.lt.u32.totalorder %s463_s26, %s743_s14 }
  0x68   : > { %p465_p13 = pnand %p464_p10, %p813_p12 }
  0x69   : > { %p470_p7 = por %p469_p5, %p468_p4 }
  0x6a   : > { %p466_p0 = pneg %p465_p13 }
  0x6b   : > { %p472_p1 = por %p471_p11, %p470_p7 }
  0x6d   : > { %p473_p3 = pnand %p472_p1, %p466_p0 }
  0x6f   : > { %476 = shalt.err (!%p473_p3)
}
  0x70   : > { %331 = dma.vmem_to_hbm [thread:$0]  (%p813_p12), %s745_s29, 128, %s743_s14, %s210_s15  }
  0x71 PF: > { %p342_p9 = scmp.ge.s32.totalorder %s549_s25, 2  ;;  %s237_s30 = sand.u32 1, %s521_s19  }
  0x72   : > { %p814_p2 = scmp.ne.s32.totalorder %s808_s9, 0  ;;  %s238_s7 = scalar_lea.sflag [#allocation6], %s237_s30 }
  0x74   : > { %p338_p6 = pnand %p342_p9, %p814_p2 }
  0x76   : > { %516 = dma.done.wait (!%p338_p6), %s238_s7, 128  }
  0x77   : > { %518 = vsyncadd (!%p338_p6), %s238_s7, 4294967168  ;;  %s22_s25 = sadd.s32 1, %s549_s25   ;;  %s815_s6 = sld [smem:[#allocation11_spill]] }
  0x78   : > { %p19_p8 = scmp.ge.s32.totalorder %s22_s25, 8   ;;  %s816_s19 = smov %s525_s20 }
  0x79   : > { %s817_s20 = smov %s529_s21  ;;  %s818_s21 = smov %s660_s11 }
  0x7a   : > { %s819_s22 = smov %s541_s24  ;;  %s820_s23 = smov %s545_s0 }
  0x7b   : > { %s821_s24 = smov %s824_s28  ;;  %21 = sbr.rel (!%p19_p8) target bundleno = 19 (0x13), region = 69 }
  0x7d   : > { %s822_s0 = smov %s815_s6 }
  0x82   :  { %243 = vsyncpa [#allocation5], 1 }
  0x83   :  { %245 = vsyncpa [#allocation5 + $0x1], 1 }
  0x84   :  { %246 = vsyncpa [#allocation6], 1 }
  0x85   :  { %248 = vsyncpa [#allocation6 + $0x1], 1 }

</bundles_post_ra>
